<compile_context>
chip_gen: v6e
topology: v6e:2x2x1
jax: 0.10.0
libtpu: 0.0.40
codegen_flags: <defaults>
</compile_context>

<pallas_src>
import functools

import jax
import jax.numpy as jnp
from jax.experimental import pallas as pl
from jax.experimental.pallas import tpu as pltpu


def _round_up(x, m):
    return (x + m - 1) // m * m


def _final_layer_kernel(shift_ref, scale1_ref, x_ref, wo_ref, bo_ref, o_ref,
                        *, d_real, eps, mask_pad):
    """LayerNorm(x) * (1+scale) + shift, then @ w_out + b_out, for one (batch, seq-tile)."""
    x = x_ref[0].astype(jnp.float32)                         # (tile_t, h_pad)
    inv_d = 1.0 / d_real

    # LayerNorm over the REAL hidden width (padded lanes of x are zero).
    mean = jnp.sum(x, axis=-1, keepdims=True) * inv_d
    xc = x - mean
    if mask_pad:
        # Two-pass variance needs padded lanes excluded (they hold -mean).
        lane = jax.lax.broadcasted_iota(jnp.int32, xc.shape, 1)
        xc = jnp.where(lane < int(d_real), xc, 0.0)
    var = jnp.sum(xc * xc, axis=-1, keepdims=True) * inv_d    # biased, as nn.LayerNorm
    x_hat = xc * jax.lax.rsqrt(var + eps)

    # Modulate with per-batch shift / (1+scale) (computed in the wrapper).
    shift = shift_ref[0].astype(jnp.float32)                  # (1, h_pad)
    scale1 = scale1_ref[0].astype(jnp.float32)                # (1, h_pad) == 1 + scale
    mod = x_hat * scale1 + shift                               # (tile_t, h_pad)

    # Final Linear on the MXU (bf16 inputs when streaming bf16, f32 accumulate).
    out = jnp.dot(mod.astype(wo_ref.dtype), wo_ref[...],
                  preferred_element_type=jnp.float32)
    out = out + bo_ref[...].astype(jnp.float32)
    o_ref[0] = out.astype(o_ref.dtype)


def prepare_final_layer_params(w_mod, b_mod, w_lin, b_lin, *,
                               stream_dtype=jnp.bfloat16):
    """One-time parameter layout plumbing (call once, outside the training/step loop).

    w_mod: (2H, H), b_mod: (2H,)  -- adaLN_modulation Linear (PyTorch (out, in))
    w_lin: (P, H),  b_lin: (P,)   -- final Linear, P = patch*patch*out_channels
    """
    two_h, h = w_mod.shape
    assert two_h == 2 * h
    p = w_lin.shape[0]
    h_pad = _round_up(max(h, 128), 128)
    p_pad = _round_up(max(p, 128), 128)
    f32 = jnp.float32

    # adaLN weights stay unpadded: shift/scale are a single small XLA matmul.
    w_mod_t = w_mod.astype(f32).T                              # (H, 2H)
    b_mod_f = b_mod.astype(f32).at[h:].add(1.0)                # fold the "+1" of (1+scale)

    # Final Linear: (out,in) -> (in,out), zero-padded lane-dense, streamed dtype.
    w_out = jnp.zeros((h_pad, p_pad), stream_dtype).at[:h, :p].set(
        w_lin.T.astype(stream_dtype))
    b_out = jnp.zeros((1, p_pad), f32).at[0, :p].set(b_lin.astype(f32))

    return dict(w_mod_t=w_mod_t, b_mod=b_mod_f, w_out=w_out, b_out=b_out,
                hidden=h, out_features=p, h_pad=h_pad, p_pad=p_pad,
                stream_dtype=jnp.dtype(stream_dtype))


def final_layer(x, c, params, *, eps=1e-6, max_tile_t=512, out_dtype=None):
    """FinalLayer forward.  x: (N, T, H), c: (N, H)  ->  (N, T, P)."""
    n, t, h = x.shape
    assert h == params["hidden"]
    h_pad, p_pad = params["h_pad"], params["p_pad"]
    p = params["out_features"]
    stream_dtype = params["stream_dtype"]
    f32 = jnp.float32
    out_dtype = jnp.dtype(out_dtype) if out_dtype is not None else x.dtype

    # ---- adaLN modulation, hoisted out of the kernel (one tiny XLA matmul) --
    c32 = c.astype(f32)
    mod = (c32 * jax.nn.sigmoid(c32)) @ params["w_mod_t"] + params["b_mod"]  # (N, 2H)
    shift = jnp.zeros((n, 1, h_pad), f32).at[:, 0, :h].set(mod[:, :h])
    scale1 = jnp.zeros((n, 1, h_pad), f32).at[:, 0, :h].set(mod[:, h:])      # 1 + scale

    # ---- sequence tiling (sublane-aligned, minimal T padding) ---------------
    t8 = _round_up(t, 8)
    n_t_tiles = -(-t8 // max_tile_t)
    tile_t = _round_up(-(-t8 // n_t_tiles), 8)
    t_pad = tile_t * n_t_tiles

    # ---- x streaming: fast path avoids any extra HBM copy of x --------------
    if t_pad == t and h_pad == h:
        x_in = x                                              # stream as-is
    else:
        x_in = jnp.zeros((n, t_pad, h_pad), stream_dtype).at[:, :t, :h].set(
            x.astype(stream_dtype))
    mask_pad = h_pad != h

    grid = (n, t_pad // tile_t)

    # VMEM footprint (double-buffered streams + resident weights + f32 temps).
    vmem_bytes = (
        2 * tile_t * h_pad * x_in.dtype.itemsize
        + 2 * tile_t * p_pad * out_dtype.itemsize
        + 2 * h_pad * p_pad * params["w_out"].dtype.itemsize
        + 2 * (2 * h_pad + p_pad) * 4
        + 3 * tile_t * h_pad * 4
        + tile_t * p_pad * 4)
    vmem_limit = int(min(max(2 * vmem_bytes, 4 << 20), 100 << 20))

    kernel = functools.partial(_final_layer_kernel, d_real=float(h), eps=eps,
                               mask_pad=mask_pad)
    out_p = pl.pallas_call(
        kernel,
        out_shape=jax.ShapeDtypeStruct((n, t_pad, p_pad), out_dtype),
        grid=grid,
        in_specs=[
            pl.BlockSpec((1, 1, h_pad), lambda b, s: (b, 0, 0)),        # shift
            pl.BlockSpec((1, 1, h_pad), lambda b, s: (b, 0, 0)),        # 1 + scale
            pl.BlockSpec((1, tile_t, h_pad), lambda b, s: (b, s, 0)),   # x tile
            pl.BlockSpec((h_pad, p_pad), lambda b, s: (0, 0)),          # w_out (resident)
            pl.BlockSpec((1, p_pad), lambda b, s: (0, 0)),              # b_out (resident)
        ],
        out_specs=pl.BlockSpec((1, tile_t, p_pad), lambda b, s: (b, s, 0)),
        compiler_params=pltpu.CompilerParams(
            dimension_semantics=("parallel", "parallel"),
            vmem_limit_bytes=vmem_limit),
    )(shift, scale1, x_in, params["w_out"], params["b_out"])

    if t_pad == t and p_pad == p:
        return out_p
    return out_p[:, :t, :p]


def _reference(x, c, w_mod, b_mod, w_lin, b_lin, eps=1e-6):
    h = x.shape[-1]
    c_act = c * jax.nn.sigmoid(c)
    mod = c_act @ w_mod.T + b_mod                             # (N, 2H)
    shift, scale = mod[:, :h], mod[:, h:]
    mean = x.mean(-1, keepdims=True)
    var = jnp.mean((x - mean) ** 2, axis=-1, keepdims=True)   # biased, like nn.LayerNorm
    x_hat = (x - mean) / jnp.sqrt(var + eps)
    y = x_hat * (1.0 + scale[:, None, :]) + shift[:, None, :]
    return y @ w_lin.T + b_lin


if __name__ == "__main__":
    key = jax.random.PRNGKey(0)
    k_x, k_c, k_wm, k_bm, k_wl, k_bl = jax.random.split(key, 6)

    N, T, HIDDEN = 2, 16, 32
    PATCH, OUT_CH = 2, 4
    P = PATCH * PATCH * OUT_CH                                # 16

    x = jax.random.normal(k_x, (N, T, HIDDEN), jnp.float32)
    c = jax.random.normal(k_c, (N, HIDDEN), jnp.float32)
    w_mod = jax.random.normal(k_wm, (2 * HIDDEN, HIDDEN), jnp.float32) * 0.02
    b_mod = jax.random.normal(k_bm, (2 * HIDDEN,), jnp.float32) * 0.02
    w_lin = jax.random.normal(k_wl, (P, HIDDEN), jnp.float32) * 0.02
    b_lin = jax.random.normal(k_bl, (P,), jnp.float32) * 0.02

    ref = _reference(x, c, w_mod, b_mod, w_lin, b_lin)

    # Strict numerics check: f32-streamed path vs f32 reference.
    params_f32 = prepare_final_layer_params(w_mod, b_mod, w_lin, b_lin,
                                            stream_dtype=jnp.float32)
    out_f32 = jax.block_until_ready(final_layer(x, c, params_f32))
    assert out_f32.shape == (N, T, P)
    assert jnp.allclose(out_f32, ref, atol=1e-4, rtol=1e-4)

    # Default bandwidth-optimized path: bf16-streamed x / w_out / output.
    params_bf16 = prepare_final_layer_params(w_mod, b_mod, w_lin, b_lin)
    out_bf16 = jax.block_until_ready(
        final_layer(x, c, params_bf16, out_dtype=jnp.bfloat16))
    assert out_bf16.shape == (N, T, P)
    assert jnp.allclose(out_bf16.astype(jnp.float32), ref, atol=3e-2, rtol=3e-2)

    print("KERNEL_OK")
</pallas_src>

<mosaic_0001>
module attributes {stable_mosaic.version = 11 : i64} {
  func.func @_final_layer_kernel(%arg0: i32, %arg1: i32, %arg2: memref<1x1x128xf32, #tpu.memory_space<vmem>>, %arg3: memref<1x1x128xf32, #tpu.memory_space<vmem>>, %arg4: memref<1x16x128xf32, #tpu.memory_space<vmem>>, %arg5: memref<128x128xf32, #tpu.memory_space<vmem>>, %arg6: memref<1x128xf32, #tpu.memory_space<vmem>>, %arg7: memref<1x16x128xf32, #tpu.memory_space<vmem>>) attributes {dimension_semantics = [#tpu.dimension_semantics<parallel>, #tpu.dimension_semantics<parallel>], iteration_bounds = array<i64: 2, 1>, scalar_prefetch = 0 : i64, scratch_operands = 0 : i64, tpu.core_type = #tpu.core_type<tc>, window_params = [{transform_indices = @transform_0, window_bounds = array<i64: 1, 1, 128>}, {transform_indices = @transform_1, window_bounds = array<i64: 1, 1, 128>}, {transform_indices = @transform_2, window_bounds = array<i64: 1, 16, 128>}, {pipeline_mode = #tpu.pipeline_mode<synchronous>, transform_indices = @transform_3, window_bounds = array<i64: 128, 128>}, {pipeline_mode = #tpu.pipeline_mode<synchronous>, transform_indices = @transform_4, window_bounds = array<i64: 1, 128>}, {transform_indices = @transform_5, window_bounds = array<i64: 1, 16, 128>}]} {
    %c0 = arith.constant 0 : index
    %c0_0 = arith.constant 0 : index
    %c0_1 = arith.constant 0 : index
    %0 = vector.load %arg4[%c0, %c0_0, %c0_1] : memref<1x16x128xf32, #tpu.memory_space<vmem>>, vector<1x16x128xf32>
    %1 = vector.shape_cast %0 : vector<1x16x128xf32> to vector<16x128xf32>
    %cst = arith.constant dense<0.000000e+00> : vector<16xf32>
    %2 = vector.multi_reduction <add>, %1, %cst [1] : vector<16x128xf32> to vector<16xf32>
    %3 = vector.shape_cast %2 : vector<16xf32> to vector<16x1xf32>
    %cst_2 = arith.constant 3.125000e-02 : f32
    %4 = vector.broadcast %cst_2 : f32 to vector<16x1xf32>
    %5 = arith.mulf %3, %4 : vector<16x1xf32>
    %6 = vector.broadcast %5 : vector<16x1xf32> to vector<16x128xf32>
    %7 = arith.subf %1, %6 : vector<16x128xf32>
    %8 = tpu.iota {dimensions = array<i32: 1>} : vector<16x128xi32>
    %c32_i32 = arith.constant 32 : i32
    %9 = vector.broadcast %c32_i32 : i32 to vector<16x128xi32>
    %10 = arith.cmpi slt, %8, %9 : vector<16x128xi32>
    %cst_3 = arith.constant 0.000000e+00 : f32
    %11 = vector.broadcast %cst_3 : f32 to vector<16x128xf32>
    %12 = arith.select %10, %7, %11 : vector<16x128xi1>, vector<16x128xf32>
    %13 = arith.mulf %12, %12 : vector<16x128xf32>
    %cst_4 = arith.constant dense<0.000000e+00> : vector<16xf32>
    %14 = vector.multi_reduction <add>, %13, %cst_4 [1] : vector<16x128xf32> to vector<16xf32>
    %15 = vector.shape_cast %14 : vector<16xf32> to vector<16x1xf32>
    %cst_5 = arith.constant 3.125000e-02 : f32
    %16 = vector.broadcast %cst_5 : f32 to vector<16x1xf32>
    %17 = arith.mulf %15, %16 : vector<16x1xf32>
    %cst_6 = arith.constant 9.99999997E-7 : f32
    %18 = vector.broadcast %cst_6 : f32 to vector<16x1xf32>
    %19 = arith.addf %17, %18 : vector<16x1xf32>
    %20 = math.rsqrt %19 : vector<16x1xf32>
    %21 = vector.broadcast %20 : vector<16x1xf32> to vector<16x128xf32>
    %22 = arith.mulf %12, %21 : vector<16x128xf32>
    %c0_7 = arith.constant 0 : index
    %c0_8 = arith.constant 0 : index
    %c0_9 = arith.constant 0 : index
    %23 = vector.load %arg2[%c0_7, %c0_8, %c0_9] : memref<1x1x128xf32, #tpu.memory_space<vmem>>, vector<1x1x128xf32>
    %24 = vector.shape_cast %23 : vector<1x1x128xf32> to vector<1x128xf32>
    %c0_10 = arith.constant 0 : index
    %c0_11 = arith.constant 0 : index
    %c0_12 = arith.constant 0 : index
    %25 = vector.load %arg3[%c0_10, %c0_11, %c0_12] : memref<1x1x128xf32, #tpu.memory_space<vmem>>, vector<1x1x128xf32>
    %26 = vector.shape_cast %25 : vector<1x1x128xf32> to vector<1x128xf32>
    %27 = vector.broadcast %26 : vector<1x128xf32> to vector<16x128xf32>
    %28 = arith.mulf %22, %27 : vector<16x128xf32>
    %29 = vector.broadcast %24 : vector<1x128xf32> to vector<16x128xf32>
    %30 = arith.addf %28, %29 : vector<16x128xf32>
    %c0_13 = arith.constant 0 : index
    %c0_14 = arith.constant 0 : index
    %31 = vector.load %arg5[%c0_13, %c0_14] : memref<128x128xf32, #tpu.memory_space<vmem>>, vector<128x128xf32>
    %cst_15 = arith.constant dense<0.000000e+00> : vector<16x128xf32>
    %32 = tpu.matmul %30, %31, %cst_15 {dimension_numbers = #tpu.dot_dimension_numbers<[1], [0], [0], [1], [0, 0, 1, 1], [], []>} : vector<16x128xf32>, vector<128x128xf32>, vector<16x128xf32> -> vector<16x128xf32>
    %c0_16 = arith.constant 0 : index
    %c0_17 = arith.constant 0 : index
    %33 = vector.load %arg6[%c0_16, %c0_17] : memref<1x128xf32, #tpu.memory_space<vmem>>, vector<1x128xf32>
    %34 = vector.broadcast %33 : vector<1x128xf32> to vector<16x128xf32>
    %35 = arith.addf %32, %34 : vector<16x128xf32>
    %c0_18 = arith.constant 0 : index
    %c0_19 = arith.constant 0 : index
    %c0_20 = arith.constant 0 : index
    %36 = vector.load %arg7[%c0_18, %c0_19, %c0_20] : memref<1x16x128xf32, #tpu.memory_space<vmem>>, vector<1x16x128xf32>
    %37 = vector.shape_cast %36 : vector<1x16x128xf32> to vector<16x128xf32>
    %38 = vector.shape_cast %35 : vector<16x128xf32> to vector<1x16x128xf32>
    tpu.vector_store %arg7[%c0_18, %c0_19, %c0_20], %38 {strides = array<i32>} : memref<1x16x128xf32, #tpu.memory_space<vmem>>, vector<1x16x128xf32>,
    return
  }
  func.func @transform_0(%arg0: i32, %arg1: i32) -> (i32, i32, i32) {
    %c0_i32 = arith.constant 0 : i32
    %c0_i32_0 = arith.constant 0 : i32
    %c0_i32_1 = arith.constant 0 : i32
    return %arg0, %c0_i32, %c0_i32_0 : i32, i32, i32
  }
  func.func @transform_1(%arg0: i32, %arg1: i32) -> (i32, i32, i32) {
    %c0_i32 = arith.constant 0 : i32
    %c0_i32_0 = arith.constant 0 : i32
    %c0_i32_1 = arith.constant 0 : i32
    return %arg0, %c0_i32, %c0_i32_0 : i32, i32, i32
  }
  func.func @transform_2(%arg0: i32, %arg1: i32) -> (i32, i32, i32) {
    %c0_i32 = arith.constant 0 : i32
    %c0_i32_0 = arith.constant 0 : i32
    return %arg0, %arg1, %c0_i32 : i32, i32, i32
  }
  func.func @transform_3(%arg0: i32, %arg1: i32) -> (i32, i32) {
    %c0_i32 = arith.constant 0 : i32
    %c0_i32_0 = arith.constant 0 : i32
    %c0_i32_1 = arith.constant 0 : i32
    return %c0_i32, %c0_i32_0 : i32, i32
  }
  func.func @transform_4(%arg0: i32, %arg1: i32) -> (i32, i32) {
    %c0_i32 = arith.constant 0 : i32
    %c0_i32_0 = arith.constant 0 : i32
    %c0_i32_1 = arith.constant 0 : i32
    return %c0_i32, %c0_i32_0 : i32, i32
  }
  func.func @transform_5(%arg0: i32, %arg1: i32) -> (i32, i32, i32) {
    %c0_i32 = arith.constant 0 : i32
    %c0_i32_0 = arith.constant 0 : i32
    return %arg0, %arg1, %c0_i32 : i32, i32, i32
  }
}

</mosaic_0001>

<bundles_post_ra>
// kernel: tpu_custom_call.1
= control target key start
LH: loop header
LB: loop body
LE: loop exit
PB: predicated region body
PF: predicated region fallthrough
CT: control target
= control target key end

     0   :  { %s1292_s0 = inlined_call_operand.hbm [shape: f32[2,1,128], index: 0, kind: input, shape index: {}]   ;;  %s1293_s1 = inlined_call_operand.hbm [shape: f32[2,1,128], index: 1, kind: input, shape index: {}]   ;;  %s1294_s2 = inlined_call_operand.hbm [shape: f32[2,16,128], index: 2, kind: input, shape index: {}]   ;;  %s1295_s3 = inlined_call_operand.hbm [shape: f32[128,128], index: 3, kind: input, shape index: {}]   ;;  %s1296_s4 = inlined_call_operand.vmem [shape: f32[1,128], index: 4, kind: input, shape index: {}]   ;;  %s1297_s5 = inlined_call_operand.hbm [shape: f32[2,16,128], index: 5, kind: output, shape index: {}]  }
   0x1   :  { %1303 = sst [smem:[#allocation17_spill]] %s1292_s0 }
   0x2   :  { %1304 = sst [smem:[#allocation18_spill]] %s1293_s1 }
   0x3   :  { %1305 = sst [smem:[#allocation19_spill]] %s1295_s3 }
   0x4   :  { %10 = vsyncpa [#allocation3], 0 }
   0x5   :  { %12 = vsyncpa [#allocation3 + $0x1], 0 }
   0x6   :  { %13 = vsyncpa [#allocation6], 0 }
   0x7   :  { %15 = vsyncpa [#allocation6 + $0x1], 0 }
   0x8   :  { %16 = vsyncpa [#allocation9], 0 }
   0x9   :  { %17 = vsyncpa [#allocation4], 0 }
   0xa   :  { %19 = vsyncpa [#allocation4 + $0x1], 0  ;;  %s1047_s18 = smov 0   ;;  %s1049_s19 = smov 0  }
   0xb   :  { %s1051_s20 = smov 0   ;;  %s1053_s21 = smov 0  }
   0xc   :  { %s1055_s22 = smov 0   ;;  %s1057_s23 = smov 0  }
   0xd LB: > { %s37_s24 = sadd.s32 1, %s1002_s22  ;;  %s44_s25 = sadd.s32 1, %s994_s20  ;;  %s1006_s23 = sphi %s1057_s23, %s25_s23   ;;  %s1002_s22 = sphi %s1055_s22, %s1331_s22   ;;  %s998_s21 = sphi %s1053_s21, %s1330_s21   ;;  %s994_s20 = sphi %s1051_s20, %s1329_s20   ;;  %s990_s19 = sphi %s1049_s19, %s1328_s19   ;;  %s986_s18 = sphi %s1047_s18, %s1327_s18  }
   0xe   : > { %p39_p0 = scmp.ge.s32.totalorder %s37_s24, 2  ;;  %p51_p1 = scmp.ne.s32.totalorder %s994_s20, %s990_s19 }
   0xf   : > { %p52_p2 = scmp.eq.s32.totalorder %s1006_s23, 0  ;;  %p748_p5 = scmp.lt.s32.totalorder %s1006_s23, 2 }
  0x10   : > { %s1333_s24 = smov (%p39_p0, %s37_s24), 0  ;;  %s1092_s27 = sand.u32 1, %s994_s20  }
  0x11   : > { %1306 = sst [smem:[#allocation15_spill]] %s1333_s24  ;;  %p53_p4 = por %p52_p2, %p51_p1 }
  0x12   : > { %s41_s26 = ssub.s32 %s1002_s22, %s1333_s24  ;;  %s645_s28 = sshll.u32 %s1002_s22, 4 }
  0x13   : > { %p42_p6 = scmp.eq.s32.totalorder %s41_s26, 0  ;;  %p1095_p7 = pnand %p748_p5, %p53_p4 }
  0x14   : > { %s238_s30 = sand.u32 1, %s1006_s23   ;;  %s1309_s1 = sld [smem:[#allocation18_spill]] }
  0x15   : > { %s1101_s6 = scalar_select %p42_p6, %s994_s20, %s44_s25  }
  0x16   : > { %s241_s10 = scalar_lea.vmem [#allocation5], %s1092_s27  ;;  %s1110_s13 = scalar_lea.sflag [#allocation6], %s238_s30 }
  0x17   : > { %1308 = sst [smem:[#allocation16_spill]] %s1101_s6  ;;  %s248_s11 = sshll.u32 %s241_s10, 4  ;;  %s249_s11 = int_to_ptr.vmem [resolvable:$true] %s248_s11 }
  0x18   : > { %p1299_p8 = pneg %p1095_p7  ;;  %s821_s14 = scalar_lea.vmem %s249_s11, 16 }
  0x19   : > { %p822_p9 = scmp.ne.s32.totalorder %s249_s11, %s821_s14  ;;  %s1008_s15 = smov [#allocation5]  }
  0x1a   : > { %s246_s9 = scalar_lea.hbm %s1309_s1, %s645_s28  ;;  %s826_s16 = sshll.u32 %s1008_s15, 4  ;;  %s827_s16 = int_to_ptr.vmem [resolvable:$false] %s826_s16 }
  0x1b   : > { %p824_p10 = pnand %p822_p9, %p1299_p8  ;;  %s828_s17 = scalar_lea.vmem %s827_s16, 32 }
  0x1c   : > { %p829_p12 = scmp.lt.s32.totalorder %s249_s11, %s827_s16  ;;  %p830_p13 = scmp.lt.s32.totalorder %s828_s17, %s821_s14 }
  0x1d   : > { %p825_p11 = pneg %p824_p10 }
  0x1e   : > { %p831_p0 = por %p830_p13, %p829_p12 }
  0x20   : > { %p832_p2 = pnand %p831_p0, %p825_p11 }
  0x22   : > { %835 = shalt.err (!%p832_p2)
}
  0x23   : > { %739 = dma.hbm_to_vmem [thread:$0]  (!%p1095_p7), %s246_s9, 16, %s249_s11, %s1110_s13  }
  0x24   : > { %s1121_s25 = sadd.s32 4294967295, %s1006_s23   ;;  %s641_s26 = sadd.s32 4294967294, %s1006_s23  }
  0x25   : > { %p57_p4 = scmp.ne.s32.totalorder %s990_s19, %s986_s18  ;;  %p1298_p5 = scmp.eq.s32.totalorder %s1121_s25, 0 }
  0x26   : > { %p179_p6 = scmp.eq.s32.totalorder %s1121_s25, 1  ;;  %p185_p9 = scmp.eq.s32.totalorder %s641_s26, 1 }
  0x27   : > { %p642_p10 = scmp.ge.s32.totalorder %s1006_s23, 1  ;;  %p1131_p11 = por %p1298_p5, %p57_p4 }
  0x28   : > { %p1138_p12 = por %p179_p6, %p51_p1  ;;  %p1142_p13 = por %p185_p9, %p57_p4 }
  0x29   : > { %p192_p0 = scmp.lt.s32.totalorder %s1006_s23, 3  ;;  %s1009_s10 = smov [#allocation8]  }
  0x2a   : > { %s204_s11 = sshll.u32 %s1009_s10, 4  ;;  %s1315_s0 = sld [smem:[#allocation17_spill]]  ;;  %s205_s11 = int_to_ptr.vmem [resolvable:$true] %s204_s11 }
  0x2b   : > { %p1147_p2 = pnand %p642_p10, %p192_p0  ;;  %s224_s26 = scalar_lea.vmem [#allocation2], %s1092_s27 }
  0x2c   : > { %s231_s12 = sshll.u32 %s224_s26, 4  ;;  %s847_s10 = scalar_lea.vmem %s205_s11, 2048  ;;  %s1167_s12 = int_to_ptr.vmem [resolvable:$true] %s231_s12 }
  0x2d   : > { %p729_p3 = pneg %p1147_p2  ;;  %p848_p6 = scmp.ne.s32.totalorder %s205_s11, %s847_s10 }
  0x2e   : > { %p855_p10 = scmp.lt.s32.totalorder %s205_s11, %s205_s11  ;;  %p856_p0 = scmp.lt.s32.totalorder %s847_s10, %s847_s10 }
  0x2f   : > { %p1155_p1 = pnand %p729_p3, %p1298_p5 }
  0x30   : > { %s1164_s17 = scalar_lea.hbm %s1315_s0, %s645_s28  ;;  %p857_p5 = por %p856_p0, %p855_p10 }
  0x31   : > { %p838_p4 = pneg %p1155_p1 }
  0x33   : > { %p850_p9 = pnand %p848_p6, %p838_p4 }
  0x35   : > { %p851_p3 = pneg %p850_p9 }
  0x37   : > { %p858_p8 = pnand %p857_p5, %p851_p3 }
  0x39   : > { %861 = shalt.err (!%p858_p8)
}
  0x3a   : > { %s1301_s1 = smov 128   ;;  %s1302_s28 = smov 8  }
  0x3b   : > { %s1316_s3 = sld [smem:[#allocation19_spill]]  ;;  %s222_s26 = scalar_lea.sflag [#allocation3], %s1092_s27 }
  0x3c   : > { %s875_s10 = scalar_lea.vmem %s1167_s12, 16  ;;  %p1317_p8 = pneg %p1095_p7 }
  0x3d   : > { %p876_p5 = scmp.ne.s32.totalorder %s1167_s12, %s875_s10  ;;  %s1012_s0 = smov [#allocation2]  }
  0x3e   : > { %s880_s24 = sshll.u32 %s1012_s0, 4  ;;  %s881_s24 = int_to_ptr.vmem [resolvable:$false] %s880_s24 }
  0x3f   : > { %p878_p4 = pnand %p876_p5, %p1317_p8  ;;  %s882_s6 = scalar_lea.vmem %s881_s24, 32 }
  0x40   : > { %p883_p9 = scmp.lt.s32.totalorder %s1167_s12, %s881_s24  ;;  %p884_p3 = scmp.lt.s32.totalorder %s882_s6, %s875_s10 }
  0x41   : > { %732 = dma.hbm_to_vmem [thread:$0]  (!%p1155_p1), %s1316_s3, 2048, %s205_s11, [#allocation9], %s1301_s1, %s1301_s1, %s1302_s28  }
  0x42   : > { %p879_p6 = pneg %p878_p4  ;;  %p885_p10 = por %p884_p3, %p883_p9 }
  0x44   : > { %p886_p0 = pnand %p885_p10, %p879_p6 }
  0x46   : > { %889 = shalt.err (!%p886_p0)
}
  0x47   : > { %736 = dma.hbm_to_vmem [thread:$0]  (!%p1095_p7), %s1164_s17, 16, %s1167_s12, %s222_s26  }
  0x48   : > { %s662_s11 = sshll.u32 %s1002_s22, 8  ;;  %s1318_s14 = sshll.u32 %s1092_s27, 4 }
  0x49   : > { %s259_s15 = scalar_lea.vmem [#allocation7], %s1318_s14  ;;  %s267_s24 = scalar_lea.hbm %s1294_s2, %s662_s11 }
  0x4a   : > { %s268_s16 = sshll.u32 %s259_s15, 4  ;;  %p1319_p5 = pmov %p1317_p8  ;;  %s269_s16 = int_to_ptr.vmem [resolvable:$true] %s268_s16 }
  0x4b   : > { %s903_s6 = scalar_lea.vmem %s269_s16, 256  ;;  %s1013_s10 = smov [#allocation7]  }
  0x4c   : > { %p904_p1 = scmp.ne.s32.totalorder %s269_s16, %s903_s6  ;;  %s908_s28 = sshll.u32 %s1013_s10, 4  ;;  %s909_s28 = int_to_ptr.vmem [resolvable:$false] %s908_s28 }
  0x4d   : > { %s910_s3 = scalar_lea.vmem %s909_s28, 512  ;;  %p911_p6 = scmp.lt.s32.totalorder %s269_s16, %s909_s28 }
  0x4e   : > { %p906_p8 = pnand %p904_p1, %p1319_p5  ;;  %p912_p9 = scmp.lt.s32.totalorder %s910_s3, %s903_s6 }
  0x50   : > { %p907_p4 = pneg %p906_p8  ;;  %p913_p3 = por %p912_p9, %p911_p6 }
  0x52   : > { %p914_p10 = pnand %p913_p3, %p907_p4 }
  0x54   : > { %917 = shalt.err (!%p914_p10)
}
  0x55   : > { %s1320_s1 = smov 8   ;;  %s1321_s27 = smov 128  }
  0x56   : > { %742 = dma.hbm_to_vmem [thread:$0]  (!%p1095_p7), %s267_s24, 256, %s269_s16, %s1110_s13, %s1321_s27, %s1321_s27, %s1320_s1  }
  0x57   : > { %280 = sbr.rel (%p1147_p2) target bundleno = 622 (0x26e), region = 40  ;;  %s1208_s12 = sand.u32 (!%p1147_p2), 1, %s990_s19  }
  0x58   : > { %s283_s3 = scalar_lea.sflag (!%p1147_p2), [#allocation3], %s1208_s12  ;;  %s285_s17 = scalar_lea.vmem (!%p1147_p2), [#allocation2], %s1208_s12 }
  0x5c   : > { %969 = dma.done.wait (%p1131_p11), %s283_s3, 16  }
  0x5d   : > { %971 = vsyncadd (%p1131_p11), %s283_s3, 4294967280  ;;  %s290_s29 = sand.u32 1, %s1121_s25   ;;  %s293_s9 = scalar_lea.vmem [#allocation5], %s1208_s12 }
  0x5e   : > { %s291_s13 = scalar_lea.sflag [#allocation6], %s290_s29 }
  0x5f   : > { %973 = dma.done.wait (%p1131_p11), %s291_s13, 272  }
  0x60   : > { %975 = vsyncadd (%p1131_p11), %s291_s13, 4294967024  ;;  %s651_s28 = sshll.u32 %s1208_s12, 4  ;;  %p1322_p7 = scmp.eq.s32.totalorder %s1121_s25, 0 }
  0x61   : > { %s302_s26 = scalar_lea.vmem [#allocation7], %s651_s28 }
  0x62   : > { %977 = dma.done.wait (%p1322_p7), [#allocation9], 2048   ;;  %p1323_p2 = pmov %p1322_p7 }
  0x63   : > { %v343_v0 = vld [vmem:[%s302_s26] sm:$0xff]  ;;  %v344_v1 = vld [vmem:[%s302_s26 + $0x8] sm:$0xff]  ;;  %v353_v4 = vlaneseq  ;;  %s340_s11 = scalar_lea.vmem [#allocation10], %s651_s28  ;;  %s663_s15 = sshll.u32 %s998_s21, 8 }
  0x64   : > { %979 = vsyncadd (%p1323_p2), [#allocation9], 4294965248  ;;  %345 = vadd.xlane.f32.xlu0 %v343_v0  ;;  %v405_v2 = vld [vmem:[#allocation8 + $0x78] sm:$0xff]  ;;  %v404_v3 = vld [vmem:[#allocation8 + $0x70] sm:$0xff]  ;;  %s506_s14 = sshll.u32 %s340_s11, 4  ;;  %s1244_s24 = scalar_lea.hbm %s1297_s5, %s663_s15  ;;  %s1239_s14 = int_to_ptr.vmem [resolvable:$true] %s506_s14 }
  0x65   : > { %682 = vmatprep.subr.mxu0 %v405_v2  ;;  %v354_v5 = vand.u32 127, %v353_v4  ;;  %v403_v16 = vld [vmem:[#allocation8 + $0x68] sm:$0xff]  ;;  %v402_v17 = vld [vmem:[#allocation8 + $0x60] sm:$0xff]  ;;  %v401_v18 = vld [vmem:[#allocation8 + $0x58] sm:$0xff]  ;;  %s491_s6 = scalar_lea.sflag [#allocation4], %s1208_s12  ;;  %s918_s10 = scalar_lea.vmem %s1239_s14, 256 }
  0x66   : > { %683 = vmatpush3.msra.mxu0 %v405_v2  ;;  %v400_v19 = vld [vmem:[#allocation8 + $0x50] sm:$0xff]  ;;  %v399_v20 = vld [vmem:[#allocation8 + $0x48] sm:$0xff]  ;;  %v398_v21 = vld [vmem:[#allocation8 + $0x40] sm:$0xff]  ;;  %p919_p11 = scmp.ne.s32.totalorder %s1239_s14, %s918_s10  ;;  %s1014_s21 = smov [#allocation10]  }
  0x67   : > { %684 = vmatprep.subr.mxu0 %v404_v3  ;;  %vm355_vm0 = vcmp.lt.s32.totalorder %v354_v5, 32  ;;  %v397_v22 = vld [vmem:[#allocation8 + $0x38] sm:$0xff]  ;;  %v396_v23 = vld [vmem:[#allocation8 + $0x30] sm:$0xff]  ;;  %v395_v24 = vld [vmem:[#allocation8 + $0x28] sm:$0xff]  ;;  %s922_s1 = sshll.u32 %s1014_s21, 4  ;;  %s923_s1 = int_to_ptr.vmem [resolvable:$false] %s922_s1 }
  0x68   : > { %347 = vadd.xlane.f32.xlu0 %v344_v1  ;;  %685 = vmatpush3.msra.mxu0 %v404_v3  ;;  %v394_v25 = vld [vmem:[#allocation8 + $0x20] sm:$0xff]  ;;  %v393_v26 = vld [vmem:[#allocation8 + $0x18] sm:$0xff]  ;;  %v392_v27 = vld [vmem:[#allocation8 + $0x10] sm:$0xff]  ;;  %p920_p0 = pnand %p919_p11, %p1138_p12  ;;  %s924_s27 = scalar_lea.vmem %s923_s1, 512 }
  0x69   : > { %686 = vmatprep.subr.mxu0 %v403_v16  ;;  %v391_v28 = vld [vmem:[#allocation8 + $0x8] sm:$0xff]  ;;  %v390_v29 = vld [vmem:[#allocation8] sm:$0xff]  ;;  %v654_v37 = vld [vmem:[%s293_s9] ss:$0 sm:$0xff]  ;;  %p925_p5 = scmp.lt.s32.totalorder %s1239_s14, %s923_s1  ;;  %p926_p8 = scmp.lt.s32.totalorder %s924_s27, %s918_s10 }
  0x6a   : > { %687 = vmatpush3.msra.mxu0 %v403_v16  ;;  %v655_v39 = vld [vmem:[%s285_s17] ss:$0 sm:$0xff]  ;;  %p921_p1 = pneg %p920_p0 }
  0x6b   : > { %688 = vmatprep.subr.mxu0 %v402_v17  ;;  %v656_v46 = vld [vmem:[%s1296_s4] ss:$0 sm:$0xff]  ;;  %p927_p4 = por %p926_p8, %p925_p5 }
  0x6c   : > { %689 = vmatpush3.msra.mxu0 %v402_v17 }
  0x6d   : > { %690 = vmatprep.subr.mxu0 %v401_v18  ;;  %p928_p6 = pnand %p927_p4, %p921_p1 }
  0x6e   : > { %691 = vmatpush3.msra.mxu0 %v401_v18 }
  0x6f   : > { %692 = vmatprep.subr.mxu0 %v400_v19 }
  0x70   : > { %693 = vmatpush3.msra.mxu0 %v400_v19 }
  0x71   : > { %694 = vmatprep.subr.mxu0 %v399_v20 }
  0x72   : > { %695 = vmatpush3.msra.mxu0 %v399_v20 }
  0x73   : > { %696 = vmatprep.subr.mxu0 %v398_v21 }
  0x74   : > { %697 = vmatpush3.msra.mxu0 %v398_v21 }
  0x75   : > { %698 = vmatprep.subr.mxu0 %v397_v22 }
  0x76   : > { %699 = vmatpush3.msra.mxu0 %v397_v22 }
  0x77   : > { %700 = vmatprep.subr.mxu0 %v396_v23 }
  0x78   : > { %701 = vmatpush3.msra.mxu0 %v396_v23 }
  0x79   : > { %702 = vmatprep.subr.mxu0 %v395_v24 }
  0x7a   : > { %703 = vmatpush3.msra.mxu0 %v395_v24 }
  0x7b   : > { %704 = vmatprep.subr.mxu0 %v394_v25 }
  0x7c   : > { %705 = vmatpush3.msra.mxu0 %v394_v25 }
  0x7d   : > { %706 = vmatprep.subr.mxu0 %v393_v26 }
  0x7e   : > { %707 = vmatpush3.msra.mxu0 %v393_v26 }
  0x7f   : > { %708 = vmatprep.subr.mxu0 %v392_v27 }
  0x80   : > { %709 = vmatpush3.msra.mxu0 %v392_v27 }
  0x81   : > { %710 = vmatprep.subr.mxu0 %v391_v28 }
  0x82   : > { %711 = vmatpush3.msra.mxu0 %v391_v28 }
  0x83   : > { %712 = vmatprep.subr.mxu0 %v390_v29 }
  0x84   : > { %713 = vmatpush3.msra.mxu0 %v390_v29 }
  0xed   : > { %v346_v6 = vpop.xlane.xlu0 %345 }
  0xee   : > { %v349_v7 = vmul.f32 0.03125, %v346_v6 }
  0xf0   : > { %v351_v8 = vsub.f32 %v343_v0, %v349_v7 }
  0xf1   : > { %v348_v9 = vpop.xlane.xlu0 %347 }
  0xf2   : > { %v350_v10 = vmul.f32 0.03125, %v348_v9  ;;  %v356_v11 = vsel %vm355_vm0, %v351_v8, 0.0 }
  0xf3   : > { %v358_v12 = vmul.f32 %v356_v11, %v356_v11 }
  0xf4   : > { %v352_v13 = vsub.f32 %v344_v1, %v350_v10 }
  0xf5   : > { %360 = vadd.xlane.f32.xlu1 %v358_v12 }
  0xf6   : > { %v357_v14 = vsel %vm355_vm0, %v352_v13, 0.0 }
  0xf7   : > { %v359_v15 = vmul.f32 %v357_v14, %v357_v14 }
  0xf9   : > { %362 = vadd.xlane.f32.xlu1 %v359_v15 }
 0x17e   : > { %v361_v30 = vpop.xlane.xlu1 %360 }
 0x17f   : > { %v364_v31 = vmul.f32 0.03125, %v361_v30 }
 0x181   : > { %v366_v32 = vadd.f32 1e-06, %v364_v31 }
 0x182   : > { %v363_v33 = vpop.xlane.xlu1 %362 }
 0x183   : > { %804 = vrsqrt.f32 %v366_v32  ;;  %v365_v34 = vmul.f32 0.03125, %v363_v33 }
 0x185   : > { %v367_v35 = vadd.f32 1e-06, %v365_v34 }
 0x187   : > { %806 = vrsqrt.f32 %v367_v35 }
 0x190   : > { %v805_v36 = vpop.eup %804 }
 0x191   : > { %v370_v38 = vmul.f32 %v805_v36, %v356_v11 }
 0x193   : > { %v380_v40 = vmul.f32 %v654_v37, %v370_v38 }
 0x194   : > { %v807_v41 = vpop.eup %806 }
 0x195   : > { %v371_v42 = vmul.f32 %v807_v41, %v357_v14  ;;  %v388_v43 = vadd.f32 %v655_v39, %v380_v40 }
 0x197   : > { %v381_v44 = vmul.f32 %v654_v37, %v371_v42  ;;  %714 = vmatprep.mubr.f32.mxu0 %v388_v43 }
 0x199   : > { %v389_v45 = vadd.f32 %v655_v39, %v381_v44 }
 0x19b   : > { %715 = vmatmul.mubr.f32.vlgmr.msra.gmra.mxu0 %v389_v45 }
 0x25b   : > { %v716_v47 = vpop.f32.mrf.mxu0 }
 0x25c   : > { %v485_v48 = vadd.f32 %v716_v47, %v656_v46 }
 0x25d   : > { %v479_v49 = vpop.f32.mrf.mxu0 }
 0x25e   : > { %489 = vst [vmem:[%s340_s11 + $0x8] sm:$0xff] %v485_v48  ;;  %v480_v50 = vadd.f32 %v656_v46, %v479_v49 }
 0x260   : > { %488 = vst [vmem:[%s340_s11] sm:$0xff] %v480_v50 }
 0x261   : > { %931 = shalt.err (!%p928_p6)
}
 0x262   : > { %s932_s3 = scalar_lea.hbm %s1244_s24, 256  ;;  %s936_s13 = scalar_lea.hbm %s1297_s5, 512 }
 0x263   : > { %p933_p9 = scmp.ne.s32.totalorder %s1244_s24, %s932_s3  ;;  %p937_p7 = scmp.lt.s32.totalorder %s1244_s24, %s1297_s5 }
 0x264   : > { %p938_p2 = scmp.lt.s32.totalorder %s936_s13, %s932_s3 }
 0x265   : > { %p934_p3 = pnand %p933_p9, %p1138_p12 }
 0x266   : > { %p939_p11 = por %p938_p2, %p937_p7 }
 0x267   : > { %p935_p10 = pneg %p934_p3 }
 0x269   : > { %p940_p0 = pnand %p939_p11, %p935_p10 }
 0x26b   : > { %943 = shalt.err (!%p940_p0)
}
 0x26c   : > { %s1015_s26 = smov 128   ;;  %s1016_s25 = smov 8  }
 0x26d   : > { %727 = dma.vmem_to_hbm [thread:$0]  (%p1138_p12), %s1239_s14, 256, %s1244_s24, %s491_s6, %s1015_s26, %s1015_s26, %s1016_s25  }
 0x26e PF: > { %s521_s30 = sand.u32 1, %s986_s18   ;;  %p1324_p1 = scmp.ge.s32.totalorder %s1006_s23, 2 }
 0x26f   : > { %s522_s11 = scalar_lea.sflag [#allocation4], %s521_s30 }
 0x270   : > { %p744_p5 = pnand %p1324_p1, %p1142_p13 }
 0x272   : > { %p745_p8 = pneg %p744_p5 }
 0x274   : > { %981 = dma.done.wait (%p745_p8), %s522_s11, 256  }
 0x275   : > { %983 = vsyncadd (%p745_p8), %s522_s11, 4294967040  ;;  %s25_s23 = sadd.s32 1, %s1006_s23   ;;  %s1325_s7 = sld [smem:[#allocation16_spill]] }
 0x276   : > { %p22_p4 = scmp.ge.s32.totalorder %s25_s23, 4   ;;  %s1326_s12 = sld [smem:[#allocation15_spill]] }
 0x277   : > { %s1327_s18 = smov %s990_s19  ;;  %s1328_s19 = smov %s994_s20 }
 0x278   : > { %s1330_s21 = smov %s1002_s22  ;;  %24 = sbr.rel (!%p22_p4) target bundleno = 13 (0xd), region = 113 }
 0x27b   : > { %s1329_s20 = smov %s1325_s7 }
 0x27c   : > { %s1331_s22 = smov %s1326_s12 }
 0x27d   :  { %527 = vsyncpa [#allocation3], 1 }
 0x27e   :  { %529 = vsyncpa [#allocation3 + $0x1], 1 }
 0x27f   :  { %530 = vsyncpa [#allocation6], 1 }
 0x280   :  { %532 = vsyncpa [#allocation6 + $0x1], 1 }
 0x281   :  { %533 = vsyncpa [#allocation9], 1 }
 0x282   :  { %534 = vsyncpa [#allocation4], 1 }
 0x283   :  { %536 = vsyncpa [#allocation4 + $0x1], 1 }

</bundles_post_ra>
